<compile_context>
chip_gen: v6e
topology: v6e:2x2x1
jax: 0.10.0
libtpu: 0.0.40
codegen_flags: <defaults>
</compile_context>

<pallas_src>
import functools

import jax
import jax.numpy as jnp
from jax.experimental import pallas as pl
from jax.experimental.pallas import tpu as pltpu


_TARGET_BLOCK_BYTES = 2 * 1024 * 1024   # ~2 MiB per streamed block
_VMEM_LIMIT_BYTES = 32 * 1024 * 1024    # safe on v5e/v6e (128 MiB) and v7x (64 MiB)


# ----------------------------- kernels --------------------------------------
# The same kernel bodies serve both grid layouts: the x block and the weight
# block broadcast against each other (numpy trailing-dim broadcasting).


def _add_pos_kernel(x_ref, w_ref, o_ref):
    o_ref[...] = (x_ref[...] + w_ref[...]).astype(o_ref.dtype)


def _add_pos_dropout_kernel(x_ref, w_ref, u_ref, o_ref, *, p):
    # Inverted dropout: keep with prob (1 - p), scale kept values by 1/(1 - p).
    y = x_ref[...] + w_ref[...]
    keep = u_ref[...] >= jnp.float32(p)
    scale = jnp.float32(1.0 / (1.0 - p))
    o_ref[...] = jnp.where(keep, y * scale, jnp.zeros_like(y)).astype(o_ref.dtype)


# --------------------------- tile selection ----------------------------------


def _round_down_mult8(n):
    return (n // 8) * 8


def _seq_tile(S, H, itemsize):
    """Seq rows per block for the 3-D path: multiple of 8, or the full S."""
    rows = _TARGET_BLOCK_BYTES // max(1, H * itemsize)
    rows = max(8, min(rows, S))
    if rows >= S:
        return S
    rows = _round_down_mult8(rows)
    t = rows
    while t >= 8:            # prefer a tile that divides S (no ragged edge)
        if S % t == 0:
            return t
        t -= 8
    return rows              # ragged edge block; Pallas masks it


def _batch_tile(B, N, itemsize):
    """Batch rows per block for the lane-dense 2-D path."""
    rows = _TARGET_BLOCK_BYTES // max(1, N * itemsize)
    rows = max(1, min(rows, B))
    if rows >= B:
        return B
    rows = max(8, _round_down_mult8(rows))
    t = rows
    while t >= 8:
        if B % t == 0:
            return t
        t -= 8
    return rows


# ------------------------------ wrapper ---------------------------------------


def learned_positional_encoding(x, weight, *, dropout_p=0.1, training=False,
                                rng_key=None):
    """Forward pass of LearnedPositionalEncoding.

    x:      (B, S, H)
    weight: (num_embeddings, H) with num_embeddings >= S
    """
    B, S, H = x.shape
    num_embeddings, Hw = weight.shape
    assert Hw == H and num_embeddings >= S

    dtype = x.dtype
    itemsize = jnp.dtype(dtype).itemsize
    p = float(dropout_p)
    apply_dropout = bool(training) and p > 0.0
    if apply_dropout and p >= 1.0:
        # Everything dropped; avoid 1/(1-p) overflow.
        return jnp.zeros((B, S, H), dtype)

    u = None
    if apply_dropout:
        if rng_key is None:
            rng_key = jax.random.PRNGKey(0)
        # TODO(synk): replace with in-kernel pltpu.prng_seed/prng_random_bits
        # (per-tile seed mixed with the grid step) on real hardware.
        u = jax.random.uniform(rng_key, (B, S, H), dtype=jnp.float32)

    # Lane-dense layout for narrow hidden dims (H < 128): fold (S, H) into the
    # lane axis so stores are full-width vst rather than masked partial stores.
    N = S * H
    flatten = (H % 128 != 0) and (N % 128 == 0) and (
        N * itemsize <= 4 * _TARGET_BLOCK_BYTES)

    if flatten:
        tb = _batch_tile(B, N, itemsize)
        grid = (pl.cdiv(B, tb),)
        x_in = x.reshape(B, N)
        # Glue: flatten the positional-table row window (S*H elements only).
        w_in = jax.lax.slice(weight, (0, 0), (S, H)).reshape(1, N)
        x_spec = pl.BlockSpec((tb, N), lambda i: (i, 0))
        w_spec = pl.BlockSpec((1, N), lambda i: (0, 0))
        o_spec = pl.BlockSpec((tb, N), lambda i: (i, 0))
        mask_in = None if u is None else u.reshape(B, N)
        call_out_shape = jax.ShapeDtypeStruct((B, N), dtype)
        semantics = ("parallel",)
    else:
        ts = _seq_tile(S, H, itemsize)
        if ts % 8 != 0:
            # ts == S and S isn't a multiple of 8: present a table whose full
            # first extent equals the block (full-extent escape hatch).
            w_in = jax.lax.slice(weight, (0, 0), (S, H))
        else:
            w_in = weight  # full table; row window expressed by the BlockSpec
        # Batch is the innermost grid axis: the weight block index depends only
        # on the seq-tile axis, so its tile stays VMEM-resident across batch.
        grid = (pl.cdiv(S, ts), B)
        x_in = x
        x_spec = pl.BlockSpec((1, ts, H), lambda j, b: (b, j, 0))
        w_spec = pl.BlockSpec((ts, H), lambda j, b: (j, 0))
        o_spec = pl.BlockSpec((1, ts, H), lambda j, b: (b, j, 0))
        mask_in = u
        call_out_shape = jax.ShapeDtypeStruct((B, S, H), dtype)
        semantics = ("parallel", "parallel")

    compiler_params = pltpu.CompilerParams(
        dimension_semantics=semantics,
        vmem_limit_bytes=_VMEM_LIMIT_BYTES,
    )

    if not apply_dropout:
        out = pl.pallas_call(
            _add_pos_kernel,
            out_shape=call_out_shape,
            grid=grid,
            in_specs=[x_spec, w_spec],
            out_specs=o_spec,
            compiler_params=compiler_params,
        )(x_in, w_in)
    else:
        kernel = functools.partial(_add_pos_dropout_kernel, p=p)
        out = pl.pallas_call(
            kernel,
            out_shape=call_out_shape,
            grid=grid,
            in_specs=[x_spec, w_spec, x_spec],   # mask streamed like x
            out_specs=o_spec,
            compiler_params=compiler_params,
        )(x_in, w_in, mask_in)

    return out.reshape(B, S, H)


# -------------------------------- main ----------------------------------------


if __name__ == "__main__":
    p = 0.1

    # Case 1: module-consistent small shape with a narrow hidden dim (H < 128)
    # -> exercises the lane-dense flattened layout.
    batch, seq_len, hidden_dim = 2, 8, 32
    num_embeddings = 50

    key = jax.random.PRNGKey(0)
    kx, kw, kx2, kw2, kdrop = jax.random.split(key, 5)

    # Deterministic xavier_normal_-style init: std = sqrt(2 / (fan_in + fan_out)).
    xavier_std = (2.0 / (num_embeddings + hidden_dim)) ** 0.5
    weight = xavier_std * jax.random.normal(
        kw, (num_embeddings, hidden_dim), dtype=jnp.float32)
    x = jax.random.normal(kx, (batch, seq_len, hidden_dim), dtype=jnp.float32)

    out_eval = jax.block_until_ready(
        learned_positional_encoding(x, weight, dropout_p=p, training=False))
    ref = x + weight[:seq_len, :][None, :, :]
    assert out_eval.shape == (batch, seq_len, hidden_dim)
    assert jnp.allclose(out_eval, ref, atol=1e-6, rtol=1e-6)

    # Training mode: every output element is either 0 (dropped) or the
    # positional-encoded value scaled by 1/(1-p).
    out_train = jax.block_until_ready(
        learned_positional_encoding(x, weight, dropout_p=p, training=True,
                                    rng_key=kdrop))
    assert out_train.shape == (batch, seq_len, hidden_dim)
    scaled = ref / (1.0 - p)
    ok = jnp.isclose(out_train, 0.0, atol=1e-6) | jnp.isclose(
        out_train, scaled, atol=1e-5, rtol=1e-5)
    assert bool(jnp.all(ok))

    # Case 2: lane-aligned hidden dim (H = 128) -> exercises the batch/seq-tiled
    # 3-D path with the weight row-window expressed purely in the BlockSpec.
    b2, s2, h2 = 2, 16, 128
    w2 = ((2.0 / (num_embeddings + h2)) ** 0.5) * jax.random.normal(
        kw2, (num_embeddings, h2), dtype=jnp.float32)
    x2 = jax.random.normal(kx2, (b2, s2, h2), dtype=jnp.float32)
    out2 = jax.block_until_ready(
        learned_positional_encoding(x2, w2, dropout_p=p, training=False))
    ref2 = x2 + w2[:s2, :][None, :, :]
    assert out2.shape == (b2, s2, h2)
    assert jnp.allclose(out2, ref2, atol=1e-6, rtol=1e-6)

    print("KERNEL_OK")
</pallas_src>

<mosaic_0001>
module attributes {stable_mosaic.version = 11 : i64} {
  func.func @_add_pos_kernel(%arg0: i32, %arg1: memref<2x256xf32, #tpu.memory_space<vmem>>, %arg2: memref<1x256xf32, #tpu.memory_space<vmem>>, %arg3: memref<2x256xf32, #tpu.memory_space<vmem>>) attributes {dimension_semantics = [#tpu.dimension_semantics<parallel>], iteration_bounds = array<i64: 1>, scalar_prefetch = 0 : i64, scratch_operands = 0 : i64, tpu.core_type = #tpu.core_type<tc>, window_params = [{transform_indices = @transform_0, window_bounds = array<i64: 2, 256>}, {pipeline_mode = #tpu.pipeline_mode<synchronous>, transform_indices = @transform_1, window_bounds = array<i64: 1, 256>}, {transform_indices = @transform_2, window_bounds = array<i64: 2, 256>}]} {
    %c0 = arith.constant 0 : index
    %c0_0 = arith.constant 0 : index
    %0 = vector.load %arg1[%c0, %c0_0] : memref<2x256xf32, #tpu.memory_space<vmem>>, vector<2x256xf32>
    %c0_1 = arith.constant 0 : index
    %c0_2 = arith.constant 0 : index
    %1 = vector.load %arg2[%c0_1, %c0_2] : memref<1x256xf32, #tpu.memory_space<vmem>>, vector<1x256xf32>
    %2 = vector.broadcast %1 : vector<1x256xf32> to vector<2x256xf32>
    %3 = arith.addf %0, %2 : vector<2x256xf32>
    %c0_3 = arith.constant 0 : index
    %c0_4 = arith.constant 0 : index
    %4 = vector.load %arg3[%c0_3, %c0_4] : memref<2x256xf32, #tpu.memory_space<vmem>>, vector<2x256xf32>
    tpu.vector_store %arg3[%c0_3, %c0_4], %3 {strides = array<i32>} : memref<2x256xf32, #tpu.memory_space<vmem>>, vector<2x256xf32>,
    return
  }
  func.func @transform_0(%arg0: i32) -> (i32, i32) {
    %c0_i32 = arith.constant 0 : i32
    %c0_i32_0 = arith.constant 0 : i32
    return %arg0, %c0_i32 : i32, i32
  }
  func.func @transform_1(%arg0: i32) -> (i32, i32) {
    %c0_i32 = arith.constant 0 : i32
    %c0_i32_0 = arith.constant 0 : i32
    %c0_i32_1 = arith.constant 0 : i32
    return %c0_i32, %c0_i32_0 : i32, i32
  }
  func.func @transform_2(%arg0: i32) -> (i32, i32) {
    %c0_i32 = arith.constant 0 : i32
    %c0_i32_0 = arith.constant 0 : i32
    return %arg0, %c0_i32 : i32, i32
  }
}

</mosaic_0001>

<bundles_post_ra>
// kernel: tpu_custom_call.1
= control target key start
LH: loop header
LB: loop body
LE: loop exit
PB: predicated region body
PF: predicated region fallthrough
CT: control target
= control target key end

     0   :  { %7 = vsyncpa [#allocation3], 0  ;;  %s172_s0 = inlined_call_operand.hbm [shape: f32[2,256], index: 0, kind: input, shape index: {}]   ;;  %s173_s1 = inlined_call_operand.hbm [shape: f32[1,256], index: 1, kind: input, shape index: {}]   ;;  %s174_s2 = inlined_call_operand.hbm [shape: f32[2,256], index: 2, kind: output, shape index: {}]  }
   0x1   :  { %8 = vsyncpa [#allocation6], 0 }
   0x2   :  { %9 = vsyncpa [#allocation4], 0  ;;  %s144_s9 = smov [#allocation2]   ;;  %s145_s11 = smov [#allocation5]  }
   0x3   :  { %s16_s10 = sshll.u32 %s144_s9, 4  ;;  %s26_s12 = sshll.u32 %s145_s11, 4  ;;  %s17_s10 = int_to_ptr.vmem [resolvable:$true] %s16_s10  ;;  %s27_s12 = int_to_ptr.vmem [resolvable:$true] %s26_s12 }
   0x4   :  { %s86_s13 = scalar_lea.vmem %s17_s10, 64  ;;  %p91_p1 = scmp.lt.s32.totalorder %s17_s10, %s17_s10 }
   0x5   :  { %p87_p0 = scmp.ne.s32.totalorder %s17_s10, %s86_s13  ;;  %p92_p2 = scmp.lt.s32.totalorder %s86_s13, %s86_s13 }
   0x7   :  { %p93_p3 = por %p92_p2, %p91_p1 }
   0x9   :  { %p94_p4 = pnand %p93_p3, %p87_p0 }
   0xb   :  { %97 = shalt.err (!%p94_p4)
}
   0xc   :  { %19 = dma.hbm_to_vmem [thread:$0]  %s172_s0, 64, %s17_s10, [#allocation3]  }
   0xd   :  { %s106_s16 = scalar_lea.vmem %s27_s12, 32  ;;  %p111_p6 = scmp.lt.s32.totalorder %s27_s12, %s27_s12 }
   0xe   :  { %p107_p5 = scmp.ne.s32.totalorder %s27_s12, %s106_s16  ;;  %p112_p7 = scmp.lt.s32.totalorder %s106_s16, %s106_s16 }
  0x10   :  { %p113_p8 = por %p112_p7, %p111_p6 }
  0x12   :  { %p114_p9 = pnand %p113_p8, %p107_p5 }
  0x14   :  { %117 = shalt.err (!%p114_p9)
}
  0x15   :  { %29 = dma.hbm_to_vmem [thread:$0]  %s173_s1, 32, %s27_s12, [#allocation6]  }
  0x16   :  { %138 = dma.done.wait [#allocation3], 64  }
  0x17   :  { %139 = vsyncadd [#allocation3], 4294967232 }
  0x18   :  { %140 = dma.done.wait [#allocation6], 32  }
  0x19   :  { %141 = vsyncadd [#allocation6], 4294967264  ;;  %v39_v0 = vlaneseq  ;;  %v146_v1 = vmov 1983009808   ;;  %v37_v7 = vld [vmem:[#allocation5] sm:$0x3] }
  0x1a   :  { %v49_v2 = vunpack.c.l.s4 %v146_v1  ;;  %v36_v12 = vld [vmem:[#allocation2] sm:$0xf]  ;;  %s147_s0 = smov [#allocation7]  }
  0x1b   :  { %v40_v3 = vshrl.u32 %v39_v0, 7  ;;  %s64_s19 = sshll.u32 %s147_s0, 4  ;;  %s65_s19 = int_to_ptr.vmem [resolvable:$true] %s64_s19 }
  0x1c   :  { %v50_v6 = vunpack.c.0.s8 %v49_v2  ;;  %s118_s1 = scalar_lea.vmem %s65_s19, 64  ;;  %p123_p11 = scmp.lt.s32.totalorder %s65_s19, %s65_s19 }
  0x1d   :  { %v41_v4 = vsub.s32 0, %v40_v3  ;;  %v45_v5 = vsub.s32 1, %v40_v3  ;;  %p119_p10 = scmp.ne.s32.totalorder %s65_s19, %s118_s1  ;;  %p124_p12 = scmp.lt.s32.totalorder %s118_s1, %s118_s1 }
  0x1e   :  { %v53_v10 = vsub.s32 %v50_v6, %v40_v3 }
  0x1f   :  { %v42_v8 = vrot.slane %v37_v7, %v41_v4  ;;  %v46_v9 = vrot.slane %v37_v7, %v45_v5  ;;  %p125_p13 = por %p124_p12, %p123_p11 }
  0x21   :  { %v47_v11 = vcombine.low %v42_v8, %v46_v9  ;;  %p126_p0 = pnand %p125_p13, %p119_p10 }
  0x23   :  { %v54_v13 = vrot.slane %v47_v11, %v53_v10 }
  0x25   :  { %v56_v14 = vadd.f32 %v54_v13, %v36_v12 }
  0x27   :  { %57 = vst [vmem:[#allocation7] sm:$0xf] %v56_v14 }
  0x28   :  { %129 = shalt.err (!%p126_p0)
}
  0x29   :  { %67 = dma.vmem_to_hbm [thread:$0]  %s65_s19, 64, %s174_s2, [#allocation4]  }
  0x2a   :  { %142 = dma.done.wait [#allocation4], 64  }
  0x2b   :  { %143 = vsyncadd [#allocation4], 4294967232 }
  0x2c   :  { %71 = vsyncpa [#allocation3], 1 }
  0x2d   :  { %72 = vsyncpa [#allocation6], 1 }
  0x2e   :  { %73 = vsyncpa [#allocation4], 1 }

</bundles_post_ra>
